<compile_context>
chip_gen: v5e
topology: v5e:2x2
jax: 0.10.0
libtpu: 0.0.40
codegen_flags: <defaults>
</compile_context>

<pallas_src>
import functools

import jax
import jax.numpy as jnp
from jax.experimental import pallas as pl
from jax.experimental.pallas import tpu as pltpu


# ----------------------------- Pallas kernel (hot path) -----------------------------

def _gate_kernel(x_ref, w_ref, b_ref, o_ref):
    # 1x1 conv on an NCHW tile.  For each image in the folded batch block:
    #   (Cout, Cin) @ (Cin, tile_hw) on the MXU (bf16 in, f32 acc) + broadcast bias add.
    # tile_hw sits on the lane axis and is a 128-multiple (except tiny maps), so stores are
    # lane-dense even when Cout is small (e.g. 64).
    w = w_ref[...]                       # (Cout, Cin) bf16, resident across the grid
    b = b_ref[...]                       # (Cout, 1)  f32,  resident across the grid
    for i in range(x_ref.shape[0]):      # static Bt: batch folded into the block
        x = x_ref[i].astype(jnp.bfloat16)                               # (Cin, tile_hw)
        acc = jnp.dot(w, x, preferred_element_type=jnp.float32)         # (Cout, tile_hw)
        o_ref[i] = (acc + b).astype(o_ref.dtype)


def _choose_tile_hw(hw, max_tile):
    """Lane-dense HW tile.

    - hw <= 128: full extent (legal block shape even if not a 128-multiple; tiny map).
    - otherwise: a multiple of 128 capped at max_tile; a non-divisible remainder is handled
      as a masked partial last block (grid uses pl.cdiv) instead of a full-extent tile.
    """
    if hw <= 128:
        return hw
    return (min(max_tile, hw) // 128) * 128


def conv1x1_gate_nchw(feat, weight_bf16, bias_col_f32, *,
                      max_tile_hw=2048, vmem_budget_bytes=16 << 20):
    """feat: (B, Cin, H, W); weight_bf16: (Cout, Cin) bf16; bias_col_f32: (Cout, 1) f32.

    Returns (B, Cout, H, W) in feat.dtype.  Works directly on NCHW: feat is viewed as
    (B, Cin, H*W) (free reshape, no transpose) and tiled along H*W (lane axis).
    """
    B, Cin, H, W = feat.shape
    Cout, Cin_w = weight_bf16.shape
    assert Cin == Cin_w, (Cin, Cin_w)
    HW = H * W
    x = feat.reshape(B, Cin, HW)                     # contiguous -> free reshape

    in_itemsize = jnp.dtype(feat.dtype).itemsize
    out_itemsize = in_itemsize                       # output follows input dtype
    tile_hw = _choose_tile_hw(HW, max_tile_hw)

    def _stream_bytes(bt, t):
        # double-buffered activation-in + output-out streams per grid step
        return 2 * bt * t * (Cin * in_itemsize + Cout * out_itemsize)

    # Fold as much of the batch as fits the VMEM budget (Bt must divide B).
    bt = B
    while bt > 1 and _stream_bytes(bt, tile_hw) > vmem_budget_bytes:
        bt -= 1
        while B % bt:
            bt -= 1
    # If still over budget at Bt == 1 (huge Cin/Cout), shrink the HW tile.
    while tile_hw > 128 and _stream_bytes(bt, tile_hw) > vmem_budget_bytes:
        tile_hw = max(128, tile_hw - 128)

    # HW-tile axis leads (most blocks first -> megacore split even when B == 1).
    grid = (pl.cdiv(HW, tile_hw), B // bt)

    out = pl.pallas_call(
        _gate_kernel,
        out_shape=jax.ShapeDtypeStruct((B, Cout, HW), feat.dtype),
        grid_spec=pltpu.PrefetchScalarGridSpec(
            num_scalar_prefetch=0,
            grid=grid,
            in_specs=[
                pl.BlockSpec((bt, Cin, tile_hw), lambda j, b: (b, 0, j)),   # activations
                pl.BlockSpec((Cout, Cin), lambda j, b: (0, 0)),             # resident weight
                pl.BlockSpec((Cout, 1), lambda j, b: (0, 0)),               # resident bias
            ],
            out_specs=pl.BlockSpec((bt, Cout, tile_hw), lambda j, b: (b, 0, j)),
        ),
        compiler_params=pltpu.CompilerParams(
            dimension_semantics=("parallel", "parallel"),
            vmem_limit_bytes=32 << 20),
        cost_estimate=pl.CostEstimate(
            flops=2 * B * HW * Cin * Cout,
            transcendentals=0,
            bytes_accessed=B * HW * (Cin * in_itemsize + Cout * out_itemsize)
                           + Cout * Cin * 2 + Cout * 4),
    )(x, weight_bf16, bias_col_f32)
    return out.reshape(B, Cout, H, W)


# ----------------------------- switch functions (glue) ------------------------------

def channels_to_depths(feat, *args):
    D = args[0][0]
    B, C, H, W = feat.shape
    return feat.reshape(B, C // D, D, H, W)


def depths_to_channels(feat, *args):
    B, C, D, H, W = feat.shape
    feat = feat.reshape(B, C * D, H, W)
    gate = args[-2]
    return gate(feat, args[-1])


# --------------------------------- module port --------------------------------------

class DepthChannelSwitcherPallas:
    def __init__(self, target_voxel_size, mode, gate_in_2d_channels=None,
                 gate_out_2d_channels_list=None, key=None):
        self.target_voxel_size = target_voxel_size
        if mode == 'chans_to_depths':
            self.switch_func = channels_to_depths
            self.out_gates = [None]
        elif mode == 'depths_to_chans':
            assert gate_in_2d_channels is not None
            assert gate_out_2d_channels_list is not None
            self.switch_func = depths_to_channels
            key = jax.random.PRNGKey(42) if key is None else key
            out_chans = [gate_in_2d_channels] + list(gate_out_2d_channels_list)
            self.gate_params = []     # f32 originals (reference / numerics)
            self._apply_params = []   # pre-cast once: (bf16 weight, (Cout,1) f32 bias)
            for out_c in out_chans:
                key, kw, kb = jax.random.split(key, 3)
                bound = 1.0 / (gate_in_2d_channels ** 0.5)   # PyTorch Conv2d default init
                w = jax.random.uniform(kw, (out_c, gate_in_2d_channels),
                                       jnp.float32, -bound, bound)
                b = jax.random.uniform(kb, (out_c,), jnp.float32, -bound, bound)
                self.gate_params.append((w, b))
                self._apply_params.append((w.astype(jnp.bfloat16),
                                           b.reshape(out_c, 1).astype(jnp.float32)))
            self.out_gates = [functools.partial(self._apply_gate, p)
                              for p in self._apply_params]
        else:
            raise NotImplementedError

    def _apply_gate(self, params, feat_nchw, meta):
        # TODO(synk): original out_2d_gate is BUILDER-built (unknown impl) and also consumes
        # `meta` (args[-1]); stand-in is a deterministic 1x1 conv + bias, `meta` ignored.
        w_bf16, b_col = params
        return conv1x1_gate_nchw(feat_nchw, w_bf16, b_col)

    def forward(self, *args):
        x = self.switch_func(args[0], self.target_voxel_size,
                             self.out_gates[0], args[-1])
        if len(args) > 2:
            new_li = []
            for fidx, _i in enumerate(args[1]):
                _i = self.switch_func(_i, self.target_voxel_size,
                                      self.out_gates[fidx + 1], args[-1])
                new_li.append(_i)
            return x, new_li
        return x


# ----------------------------------- reference ---------------------------------------

def _ref_gate(params, feat_nchw):
    w, b = params  # (Cout, Cin), (Cout,)
    return jnp.einsum('bchw,oc->bohw', feat_nchw, w) + b[None, :, None, None]


# ------------------------------------- main -------------------------------------------

if __name__ == "__main__":
    key = jax.random.PRNGKey(0)
    B, C, D, H, W = 2, 16, 8, 16, 16       # C*D = 128 gate channels, H*W = 256 lanes
    k1, k2 = jax.random.split(key)

    # --- mode 1: chans_to_depths (pure reshape) ---
    x2d = jax.random.normal(k1, (B, C * D, H, W), jnp.float32)
    switch_c2d = DepthChannelSwitcherPallas((D,), 'chans_to_depths')
    x5d = switch_c2d.forward(x2d, None)                 # (B, C, D, H, W)
    assert x5d.shape == (B, C, D, H, W)

    # --- mode 2: depths_to_chans (reshape + Pallas NCHW 1x1-conv gate) ---
    extra = jax.random.normal(k2, (B, C, D, H, W), jnp.float32)
    switch_d2c = DepthChannelSwitcherPallas(
        (D,), 'depths_to_chans',
        gate_in_2d_channels=C * D,
        gate_out_2d_channels_list=[64],
        key=jax.random.PRNGKey(1))

    out, new_li = switch_d2c.forward(x5d, [extra], None)
    out = jax.block_until_ready(out)
    new_li = [jax.block_until_ready(t) for t in new_li]

    assert out.shape == (B, C * D, H, W)
    assert new_li[0].shape == (B, 64, H, W)

    # numerical check against plain-JAX f32 reference of the stand-in gate
    # (bf16 MXU inputs with f32 accumulation -> ~1e-2 relative error is expected)
    ref0 = _ref_gate(switch_d2c.gate_params[0], x5d.reshape(B, C * D, H, W))
    ref1 = _ref_gate(switch_d2c.gate_params[1], extra.reshape(B, C * D, H, W))
    ok = (jnp.allclose(out, ref0, atol=2e-2, rtol=2e-2)
          and jnp.allclose(new_li[0], ref1, atol=2e-2, rtol=2e-2)
          and bool(jnp.all(x5d == x2d.reshape(B, C, D, H, W))))

    if ok:
        print("KERNEL_OK")
    else:
        print("KERNEL_MISMATCH")
</pallas_src>

<mosaic_0001>
module attributes {stable_mosaic.version = 11 : i64} {
  func.func @_gate_kernel(%arg0: i32, %arg1: i32, %arg2: memref<2x128x256xf32, #tpu.memory_space<vmem>>, %arg3: memref<128x128xbf16, #tpu.memory_space<vmem>>, %arg4: memref<128x1xf32, #tpu.memory_space<vmem>>, %arg5: memref<2x128x256xf32, #tpu.memory_space<vmem>>) attributes {dimension_semantics = [#tpu.dimension_semantics<parallel>, #tpu.dimension_semantics<parallel>], iteration_bounds = array<i64: 1, 1>, scalar_prefetch = 0 : i64, scratch_operands = 0 : i64, tpu.core_type = #tpu.core_type<tc>, window_params = [{transform_indices = @transform_0, window_bounds = array<i64: 2, 128, 256>}, {pipeline_mode = #tpu.pipeline_mode<synchronous>, transform_indices = @transform_1, window_bounds = array<i64: 128, 128>}, {pipeline_mode = #tpu.pipeline_mode<synchronous>, transform_indices = @transform_2, window_bounds = array<i64: 128, 1>}, {transform_indices = @transform_3, window_bounds = array<i64: 2, 128, 256>}]} {
    %c0 = arith.constant 0 : index
    %c0_0 = arith.constant 0 : index
    %0 = vector.load %arg3[%c0, %c0_0] : memref<128x128xbf16, #tpu.memory_space<vmem>>, vector<128x128xbf16>
    %c0_1 = arith.constant 0 : index
    %c0_2 = arith.constant 0 : index
    %1 = vector.load %arg4[%c0_1, %c0_2] : memref<128x1xf32, #tpu.memory_space<vmem>>, vector<128x1xf32>
    %c0_3 = arith.constant 0 : index
    %c0_4 = arith.constant 0 : index
    %c0_5 = arith.constant 0 : index
    %2 = vector.load %arg2[%c0_3, %c0_4, %c0_5] : memref<2x128x256xf32, #tpu.memory_space<vmem>>, vector<1x128x256xf32>
    %3 = vector.shape_cast %2 : vector<1x128x256xf32> to vector<128x256xf32>
    %4 = arith.truncf %3 : vector<128x256xf32> to vector<128x256xbf16>
    %cst = arith.constant dense<0.000000e+00> : vector<128x256xf32>
    %5 = tpu.matmul %0, %4, %cst {dimension_numbers = #tpu.dot_dimension_numbers<[1], [0], [0], [1], [0, 0, 1, 1], [], []>} : vector<128x128xbf16>, vector<128x256xbf16>, vector<128x256xf32> -> vector<128x256xf32>
    %6 = vector.broadcast %1 : vector<128x1xf32> to vector<128x256xf32>
    %7 = arith.addf %5, %6 : vector<128x256xf32>
    %c0_6 = arith.constant 0 : index
    %c0_7 = arith.constant 0 : index
    %c0_8 = arith.constant 0 : index
    %8 = vector.load %arg5[%c0_6, %c0_7, %c0_8] : memref<2x128x256xf32, #tpu.memory_space<vmem>>, vector<1x128x256xf32>
    %9 = vector.shape_cast %8 : vector<1x128x256xf32> to vector<128x256xf32>
    %10 = vector.shape_cast %7 : vector<128x256xf32> to vector<1x128x256xf32>
    tpu.vector_store %arg5[%c0_6, %c0_7, %c0_8], %10 {strides = array<i32>} : memref<2x128x256xf32, #tpu.memory_space<vmem>>, vector<1x128x256xf32>,
    %c1 = arith.constant 1 : index
    %c0_9 = arith.constant 0 : index
    %c0_10 = arith.constant 0 : index
    %11 = vector.load %arg2[%c1, %c0_9, %c0_10] : memref<2x128x256xf32, #tpu.memory_space<vmem>>, vector<1x128x256xf32>
    %12 = vector.shape_cast %11 : vector<1x128x256xf32> to vector<128x256xf32>
    %13 = arith.truncf %12 : vector<128x256xf32> to vector<128x256xbf16>
    %cst_11 = arith.constant dense<0.000000e+00> : vector<128x256xf32>
    %14 = tpu.matmul %0, %13, %cst_11 {dimension_numbers = #tpu.dot_dimension_numbers<[1], [0], [0], [1], [0, 0, 1, 1], [], []>} : vector<128x128xbf16>, vector<128x256xbf16>, vector<128x256xf32> -> vector<128x256xf32>
    %15 = vector.broadcast %1 : vector<128x1xf32> to vector<128x256xf32>
    %16 = arith.addf %14, %15 : vector<128x256xf32>
    %c1_12 = arith.constant 1 : index
    %c0_13 = arith.constant 0 : index
    %c0_14 = arith.constant 0 : index
    %17 = vector.load %arg5[%c1_12, %c0_13, %c0_14] : memref<2x128x256xf32, #tpu.memory_space<vmem>>, vector<1x128x256xf32>
    %18 = vector.shape_cast %17 : vector<1x128x256xf32> to vector<128x256xf32>
    %19 = vector.shape_cast %16 : vector<128x256xf32> to vector<1x128x256xf32>
    tpu.vector_store %arg5[%c1_12, %c0_13, %c0_14], %19 {strides = array<i32>} : memref<2x128x256xf32, #tpu.memory_space<vmem>>, vector<1x128x256xf32>,
    return
  }
  func.func @transform_0(%arg0: i32, %arg1: i32) -> (i32, i32, i32) {
    %c0_i32 = arith.constant 0 : i32
    %c0_i32_0 = arith.constant 0 : i32
    return %arg1, %c0_i32, %arg0 : i32, i32, i32
  }
  func.func @transform_1(%arg0: i32, %arg1: i32) -> (i32, i32) {
    %c0_i32 = arith.constant 0 : i32
    %c0_i32_0 = arith.constant 0 : i32
    %c0_i32_1 = arith.constant 0 : i32
    return %c0_i32, %c0_i32_0 : i32, i32
  }
  func.func @transform_2(%arg0: i32, %arg1: i32) -> (i32, i32) {
    %c0_i32 = arith.constant 0 : i32
    %c0_i32_0 = arith.constant 0 : i32
    %c0_i32_1 = arith.constant 0 : i32
    return %c0_i32, %c0_i32_0 : i32, i32
  }
  func.func @transform_3(%arg0: i32, %arg1: i32) -> (i32, i32, i32) {
    %c0_i32 = arith.constant 0 : i32
    %c0_i32_0 = arith.constant 0 : i32
    return %arg1, %c0_i32, %arg0 : i32, i32, i32
  }
}

</mosaic_0001>

<bundles_post_ra>
// kernel: tpu_custom_call.1
= control target key start
LH: loop header
LB: loop body
LE: loop exit
PB: predicated region body
PF: predicated region fallthrough
CT: control target
= control target key end

     0   :  { %8 = vsyncpa [#allocation3], 0  ;;  %s777_s0 = inlined_call_operand.hbm [shape: f32[2,128,256], index: 0, kind: input, shape index: {}]   ;;  %s778_s1 = inlined_call_operand.vmem [shape: bf16[128,128], index: 1, kind: input, shape index: {}]   ;;  %s779_s2 = inlined_call_operand.vmem [shape: f32[128,1], index: 2, kind: input, shape index: {}]   ;;  %s780_s3 = inlined_call_operand.hbm [shape: f32[2,128,256], index: 3, kind: output, shape index: {}]  }
   0x1   :  { %9 = vsyncpa [#allocation4], 0  ;;  %s14_s14 = sshll.u32 %s777_s0, 4  ;;  %s668_s15 = smov [#allocation2]   ;;  %s15_s14 = int_to_ptr.hbm [resolvable:$true] %s14_s14 }
   0x2   :  { %s16_s16 = sshll.u32 %s668_s15, 4  ;;  %s669_s17 = smov 256   ;;  %s17_s16 = int_to_ptr.vmem [resolvable:$true] %s16_s16 }
   0x3   :  { %s670_s18 = smov 16  }
   0x4   :  { %22 = dma.hbm_to_vmem [thread:$0]  %s15_s14, 8192, %s17_s16, [#allocation3], %s669_s17, %s669_s17, %s670_s18  }
   0x5   :  { %664 = dma.done.wait [#allocation3], 8192  }
   0x6   :  { %665 = vsyncadd [#allocation3], 4294959104  ;;  %v91_v0 = vld [vmem:[#allocation2 + $0xe0] sm:$0xff]  ;;  %v93_v1 = vld [vmem:[#allocation2 + $0xf0] sm:$0xff]  ;;  %v671_v25 = vmov 0   ;;  %s555_s15 = sshll.u32 %s780_s3, 4  ;;  %s556_s15 = int_to_ptr.hbm [resolvable:$true] %s555_s15 }
   0x7   :  { %v92_v2 = vld [vmem:[#allocation2 + $0xe8] sm:$0xff]  ;;  %v109_v3 = vpack.c.bf16 %v93_v1, %v91_v0  ;;  %v94_v4 = vld [vmem:[#allocation2 + $0xf8] sm:$0xff]  ;;  %v398_v5 = vld [vmem:[#allocation2 + $0x1e0] sm:$0xff]  ;;  %613 = vset.pattern.permute.xlu0 %v671_v25  ;;  %614 = vset.pattern.permute.xlu1 %v671_v25 }
   0x8   :  { %v400_v6 = vld [vmem:[#allocation2 + $0x1f0] sm:$0xff]  ;;  %v110_v7 = vpack.c.bf16 %v94_v4, %v92_v2  ;;  %v399_v9 = vld [vmem:[#allocation2 + $0x1e8] sm:$0xff]  ;;  %v401_v10 = vld [vmem:[#allocation2 + $0x1f8] sm:$0xff]  ;;  %615 = vset.pattern.permute.xlu2 %v671_v25 }
   0x9   :  { %v416_v8 = vpack.c.bf16 %v400_v6, %v398_v5  ;;  %v87_v11 = vld [vmem:[#allocation2 + $0xc0] sm:$0xff]  ;;  %239 = vmatpush.bf16.msra.mxu0 %v109_v3  ;;  %v417_v12 = vpack.c.bf16 %v401_v10, %v399_v9  ;;  %v89_v13 = vld [vmem:[#allocation2 + $0xd0] sm:$0xff]  ;;  %v88_v14 = vld [vmem:[#allocation2 + $0xc8] sm:$0xff] }
   0xa   :  { %v90_v15 = vld [vmem:[#allocation2 + $0xd8] sm:$0xff]  ;;  %288 = vmatpush.bf16.msra.mxu1 %v110_v7  ;;  %v107_v16 = vpack.c.bf16 %v89_v13, %v87_v11  ;;  %v394_v18 = vld [vmem:[#allocation2 + $0x1c0] sm:$0xff]  ;;  %v396_v19 = vld [vmem:[#allocation2 + $0x1d0] sm:$0xff] }
   0xb   :  { %418 = vmatpush.bf16.msra.mxu2 %v416_v8  ;;  %v108_v17 = vpack.c.bf16 %v90_v15, %v88_v14  ;;  %v395_v20 = vld [vmem:[#allocation2 + $0x1c8] sm:$0xff]  ;;  %467 = vmatpush.bf16.msra.mxu3 %v417_v12  ;;  %v414_v21 = vpack.c.bf16 %v396_v19, %v394_v18  ;;  %v397_v22 = vld [vmem:[#allocation2 + $0x1d8] sm:$0xff]  ;;  %v83_v23 = vld [vmem:[#allocation2 + $0xa0] sm:$0xff] }
   0xc   :  { %v85_v24 = vld [vmem:[#allocation2 + $0xb0] sm:$0xff]  ;;  %v415_v26 = vpack.c.bf16 %v397_v22, %v395_v20  ;;  %v84_v27 = vld [vmem:[#allocation2 + $0xa8] sm:$0xff]  ;;  %v86_v28 = vld [vmem:[#allocation2 + $0xb8] sm:$0xff] }
   0xd   :  { %v390_v29 = vld [vmem:[#allocation2 + $0x1a0] sm:$0xff]  ;;  %240 = vmatpush.bf16.msra.mxu0 %v107_v16  ;;  %v105_v30 = vpack.c.bf16 %v85_v24, %v83_v23  ;;  %v392_v31 = vld [vmem:[#allocation2 + $0x1b0] sm:$0xff]  ;;  %v391_v32 = vld [vmem:[#allocation2 + $0x1a8] sm:$0xff]  ;;  %v106_v34 = vpack.c.bf16 %v86_v28, %v84_v27 }
   0xe   :  { %v393_v33 = vld [vmem:[#allocation2 + $0x1b8] sm:$0xff]  ;;  %289 = vmatpush.bf16.msra.mxu1 %v108_v17  ;;  %v412_v35 = vpack.c.bf16 %v392_v31, %v390_v29  ;;  %v79_v36 = vld [vmem:[#allocation2 + $0x80] sm:$0xff]  ;;  %v81_v37 = vld [vmem:[#allocation2 + $0x90] sm:$0xff] }
   0xf   :  { %419 = vmatpush.bf16.msra.mxu2 %v414_v21  ;;  %v80_v38 = vld [vmem:[#allocation2 + $0x88] sm:$0xff]  ;;  %468 = vmatpush.bf16.msra.mxu3 %v415_v26  ;;  %v413_v39 = vpack.c.bf16 %v393_v33, %v391_v32  ;;  %v82_v40 = vld [vmem:[#allocation2 + $0x98] sm:$0xff]  ;;  %v386_v41 = vld [vmem:[#allocation2 + $0x180] sm:$0xff]  ;;  %v103_v45 = vpack.c.bf16 %v81_v37, %v79_v36 }
  0x10   :  { %v388_v42 = vld [vmem:[#allocation2 + $0x190] sm:$0xff]  ;;  %v387_v43 = vld [vmem:[#allocation2 + $0x188] sm:$0xff]  ;;  %v389_v44 = vld [vmem:[#allocation2 + $0x198] sm:$0xff]  ;;  %v104_v46 = vpack.c.bf16 %v82_v40, %v80_v38 }
  0x11   :  { %241 = vmatpush.bf16.msra.mxu0 %v105_v30  ;;  %v410_v47 = vpack.c.bf16 %v388_v42, %v386_v41  ;;  %v75_v48 = vld [vmem:[#allocation2 + $0x60] sm:$0xff]  ;;  %v77_v49 = vld [vmem:[#allocation2 + $0x70] sm:$0xff]  ;;  %v76_v50 = vld [vmem:[#allocation2 + $0x68] sm:$0xff]  ;;  %v411_v51 = vpack.c.bf16 %v389_v44, %v387_v43 }
  0x12   :  { %290 = vmatpush.bf16.msra.mxu1 %v106_v34  ;;  %v78_v52 = vld [vmem:[#allocation2 + $0x78] sm:$0xff]  ;;  %v382_v53 = vld [vmem:[#allocation2 + $0x160] sm:$0xff]  ;;  %v384_v54 = vld [vmem:[#allocation2 + $0x170] sm:$0xff]  ;;  %v101_v57 = vpack.c.bf16 %v77_v49, %v75_v48 }
  0x13   :  { %420 = vmatpush.bf16.msra.mxu2 %v412_v35  ;;  %469 = vmatpush.bf16.msra.mxu3 %v413_v39  ;;  %v383_v55 = vld [vmem:[#allocation2 + $0x168] sm:$0xff]  ;;  %v385_v56 = vld [vmem:[#allocation2 + $0x178] sm:$0xff]  ;;  %v102_v58 = vpack.c.bf16 %v78_v52, %v76_v50  ;;  %v408_v59 = vpack.c.bf16 %v384_v54, %v382_v53  ;;  %v71_v60 = vld [vmem:[#allocation2 + $0x40] sm:$0xff] }
  0x14   :  { %v73_v61 = vld [vmem:[#allocation2 + $0x50] sm:$0xff]  ;;  %v72_v62 = vld [vmem:[#allocation2 + $0x48] sm:$0xff]  ;;  %v409_v63 = vpack.c.bf16 %v385_v56, %v383_v55  ;;  %v74_v0 = vld [vmem:[#allocation2 + $0x58] sm:$0xff] }
  0x15   :  { %242 = vmatpush.bf16.msra.mxu0 %v103_v45  ;;  %v378_v1 = vld [vmem:[#allocation2 + $0x140] sm:$0xff]  ;;  %v380_v2 = vld [vmem:[#allocation2 + $0x150] sm:$0xff]  ;;  %v379_v3 = vld [vmem:[#allocation2 + $0x148] sm:$0xff]  ;;  %v99_v5 = vpack.c.bf16 %v73_v61, %v71_v60  ;;  %v100_v7 = vpack.c.bf16 %v74_v0, %v72_v62 }
  0x16   :  { %291 = vmatpush.bf16.msra.mxu1 %v104_v46  ;;  %v381_v4 = vld [vmem:[#allocation2 + $0x158] sm:$0xff]  ;;  %v67_v6 = vld [vmem:[#allocation2 + $0x20] sm:$0xff]  ;;  %v406_v8 = vpack.c.bf16 %v380_v2, %v378_v1  ;;  %v69_v9 = vld [vmem:[#allocation2 + $0x30] sm:$0xff] }
  0x17   :  { %421 = vmatpush.bf16.msra.mxu2 %v410_v47  ;;  %470 = vmatpush.bf16.msra.mxu3 %v411_v51  ;;  %v68_v10 = vld [vmem:[#allocation2 + $0x28] sm:$0xff]  ;;  %v70_v11 = vld [vmem:[#allocation2 + $0x38] sm:$0xff]  ;;  %v407_v12 = vpack.c.bf16 %v381_v4, %v379_v3  ;;  %v374_v13 = vld [vmem:[#allocation2 + $0x120] sm:$0xff]  ;;  %v97_v19 = vpack.c.bf16 %v69_v9, %v67_v6 }
  0x18   :  { %v376_v14 = vld [vmem:[#allocation2 + $0x130] sm:$0xff]  ;;  %v47_v15 = vld [vmem:[%s779_s2] sm:$0xff]  ;;  %v375_v16 = vld [vmem:[#allocation2 + $0x128] sm:$0xff]  ;;  %v98_v20 = vpack.c.bf16 %v70_v11, %v68_v10 }
  0x19   :  { %243 = vmatpush.bf16.msra.mxu0 %v101_v57  ;;  %v377_v17 = vld [vmem:[#allocation2 + $0x138] sm:$0xff]  ;;  %113 = vperm.xlu0 %613, %v47_v15   ;;  %v49_v18 = vld [vmem:[%s779_s2 + $0x10] sm:$0xff]  ;;  %v404_v21 = vpack.c.bf16 %v376_v14, %v374_v13  ;;  %v63_v22 = vld [vmem:[#allocation2] sm:$0xff] }
  0x1a   :  { %292 = vmatpush.bf16.msra.mxu1 %v102_v58  ;;  %123 = vperm.xlu1 %614, %v49_v18   ;;  %v65_v23 = vld [vmem:[#allocation2 + $0x10] sm:$0xff]  ;;  %v64_v24 = vld [vmem:[#allocation2 + $0x8] sm:$0xff]  ;;  %v405_v25 = vpack.c.bf16 %v377_v17, %v375_v16  ;;  %v66_v26 = vld [vmem:[#allocation2 + $0x18] sm:$0xff] }
  0x1b   :  { %422 = vmatpush.bf16.msra.mxu2 %v408_v59  ;;  %471 = vmatpush.bf16.msra.mxu3 %v409_v63  ;;  %v370_v27 = vld [vmem:[#allocation2 + $0x100] sm:$0xff]  ;;  %v372_v28 = vld [vmem:[#allocation2 + $0x110] sm:$0xff]  ;;  %v371_v29 = vld [vmem:[#allocation2 + $0x108] sm:$0xff]  ;;  %v95_v31 = vpack.c.bf16 %v65_v23, %v63_v22  ;;  %v96_v33 = vpack.c.bf16 %v66_v26, %v64_v24 }
  0x1c   :  { %v373_v30 = vld [vmem:[#allocation2 + $0x118] sm:$0xff]  ;;  %v48_v32 = vld [vmem:[%s779_s2 + $0x8] sm:$0xff]  ;;  %v402_v34 = vpack.c.bf16 %v372_v28, %v370_v27  ;;  %v600_v36 = vld [vmem:[%s778_s1] sm:$0xff] }
  0x1d   :  { %244 = vmatpush.bf16.msra.mxu0 %v99_v5  ;;  %v403_v35 = vpack.c.bf16 %v373_v30, %v371_v29  ;;  %v50_v37 = vld [vmem:[%s779_s2 + $0x18] sm:$0xff]  ;;  %v601_v38 = vld [vmem:[%s778_s1 + $0x8] sm:$0xff]  ;;  %v602_v39 = vld [vmem:[%s778_s1 + $0x10] sm:$0xff] }
  0x1e   :  { %293 = vmatpush.bf16.msra.mxu1 %v100_v7  ;;  %v53_v40 = vld [vmem:[%s779_s2 + $0x30] sm:$0xff]  ;;  %v51_v41 = vld [vmem:[%s779_s2 + $0x20] sm:$0xff]  ;;  %v54_v42 = vld [vmem:[%s779_s2 + $0x38] sm:$0xff] }
  0x1f   :  { %423 = vmatpush.bf16.msra.mxu2 %v406_v8  ;;  %472 = vmatpush.bf16.msra.mxu3 %v407_v12  ;;  %v52_v43 = vld [vmem:[%s779_s2 + $0x28] sm:$0xff]  ;;  %v603_v44 = vld [vmem:[%s778_s1 + $0x18] sm:$0xff]  ;;  %v59_v46 = vld [vmem:[%s779_s2 + $0x60] sm:$0xff] }
  0x20   :  { %133 = vperm.xlu2 %615, %v51_v41   ;;  %v56_v45 = vld [vmem:[%s779_s2 + $0x48] sm:$0xff]  ;;  %v604_v47 = vld [vmem:[%s778_s1 + $0x20] sm:$0xff]  ;;  %v57_v48 = vld [vmem:[%s779_s2 + $0x50] sm:$0xff] }
  0x21   :  { %245 = vmatpush.bf16.msra.mxu0 %v97_v19  ;;  %118 = vperm.xlu0 %613, %v48_v32   ;;  %v62_v49 = vld [vmem:[%s779_s2 + $0x78] sm:$0xff]  ;;  %v55_v50 = vld [vmem:[%s779_s2 + $0x40] sm:$0xff]  ;;  %v60_v51 = vld [vmem:[%s779_s2 + $0x68] sm:$0xff] }
  0x22   :  { %294 = vmatpush.bf16.msra.mxu1 %v98_v20  ;;  %128 = vperm.xlu1 %614, %v50_v37   ;;  %v605_v52 = vld [vmem:[%s778_s1 + $0x28] sm:$0xff]  ;;  %v58_v53 = vld [vmem:[%s779_s2 + $0x58] sm:$0xff]  ;;  %v606_v54 = vld [vmem:[%s778_s1 + $0x30] sm:$0xff] }
  0x23   :  { %424 = vmatpush.bf16.msra.mxu2 %v404_v21  ;;  %473 = vmatpush.bf16.msra.mxu3 %v405_v25  ;;  %v61_v55 = vld [vmem:[%s779_s2 + $0x70] sm:$0xff]  ;;  %v607_v56 = vld [vmem:[%s778_s1 + $0x38] sm:$0xff]  ;;  %s672_s1 = smov [#allocation5]  }
  0x24   :  { %s553_s2 = sshll.u32 %s672_s1, 4  ;;  %s554_s2 = int_to_ptr.vmem [resolvable:$true] %s553_s2 }
  0x25   :  { %246 = vmatpush.bf16.msra.mxu0 %v95_v31 }
  0x26   :  { %295 = vmatpush.bf16.msra.mxu1 %v96_v33 }
  0x27   :  { %425 = vmatpush.bf16.msra.mxu2 %v402_v34  ;;  %474 = vmatpush.bf16.msra.mxu3 %v403_v35 }
  0x28   :  { %247 = vmatmul.bf16.vlgmr.msra.gmra.mxu0 %v600_v36  ;;  %138 = vperm.xlu2 %615, %v52_v43  }
  0x29   :  { %296 = vmatmul.bf16.vlgmr.msra.gmra.mxu1 %v600_v36  ;;  %143 = vperm.xlu0 %613, %v53_v40  }
  0x2a   :  { %426 = vmatmul.bf16.vlgmr.msra.gmra.mxu2 %v600_v36  ;;  %475 = vmatmul.bf16.vlgmr.msra.gmra.mxu3 %v600_v36 }
  0x2b   :  { %148 = vperm.xlu1 %614, %v54_v42  }
  0x30   :  { %153 = vperm.xlu2 %615, %v55_v50  }
  0x31   :  { %158 = vperm.xlu0 %613, %v56_v45  }
  0x33   :  { %163 = vperm.xlu1 %614, %v57_v48  }
  0x38   :  { %252 = vmatmul.bf16.gmra.mxu0 %v601_v38  ;;  %168 = vperm.xlu2 %615, %v58_v53  }
  0x39   :  { %301 = vmatmul.bf16.gmra.mxu1 %v601_v38  ;;  %173 = vperm.xlu0 %613, %v59_v46  }
  0x3a   :  { %431 = vmatmul.bf16.gmra.mxu2 %v601_v38  ;;  %480 = vmatmul.bf16.gmra.mxu3 %v601_v38 }
  0x3b   :  { %178 = vperm.xlu1 %614, %v60_v51  }
  0x40   :  { %183 = vperm.xlu2 %615, %v61_v55  }
  0x41   :  { %188 = vperm.xlu0 %613, %v62_v49  }
  0x48   :  { %257 = vmatmul.bf16.gmra.mxu0 %v602_v39 }
  0x49   :  { %306 = vmatmul.bf16.gmra.mxu1 %v602_v39 }
  0x4a   :  { %436 = vmatmul.bf16.gmra.mxu2 %v602_v39  ;;  %485 = vmatmul.bf16.gmra.mxu3 %v602_v39 }
  0x58   :  { %262 = vmatmul.bf16.gmra.mxu0 %v603_v44 }
  0x59   :  { %311 = vmatmul.bf16.gmra.mxu1 %v603_v44 }
  0x5a   :  { %441 = vmatmul.bf16.gmra.mxu2 %v603_v44  ;;  %490 = vmatmul.bf16.gmra.mxu3 %v603_v44 }
  0x68   :  { %267 = vmatmul.bf16.gmra.mxu0 %v604_v47 }
  0x69   :  { %316 = vmatmul.bf16.gmra.mxu1 %v604_v47 }
  0x6a   :  { %446 = vmatmul.bf16.gmra.mxu2 %v604_v47  ;;  %495 = vmatmul.bf16.gmra.mxu3 %v604_v47 }
  0x78   :  { %272 = vmatmul.bf16.gmra.mxu0 %v605_v52 }
  0x79   :  { %321 = vmatmul.bf16.gmra.mxu1 %v605_v52 }
  0x7a   :  { %451 = vmatmul.bf16.gmra.mxu2 %v605_v52  ;;  %500 = vmatmul.bf16.gmra.mxu3 %v605_v52  ;;  %v134_v25 = vpop.permute.xlu2 %133 }
  0x82   :  { %v139_v34 = vpop.permute.xlu2 %138 }
  0x88   :  { %277 = vmatmul.bf16.gmra.mxu0 %v606_v54 }
  0x89   :  { %326 = vmatmul.bf16.gmra.mxu1 %v606_v54 }
  0x8a   :  { %456 = vmatmul.bf16.gmra.mxu2 %v606_v54  ;;  %505 = vmatmul.bf16.gmra.mxu3 %v606_v54 }
  0x8b   :  { %v114_v57 = vpop.permute.xlu0 %113 }
  0x8c   :  { %v124_v7 = vpop.permute.xlu1 %123 }
  0x93   :  { %v119_v62 = vpop.permute.xlu0 %118 }
  0x94   :  { %v129_v16 = vpop.permute.xlu1 %128 }
  0x98   :  { %282 = vmatmul.bf16.gmra.mxu0 %v607_v56 }
  0x99   :  { %331 = vmatmul.bf16.gmra.mxu1 %v607_v56 }
  0x9a   :  { %461 = vmatmul.bf16.gmra.mxu2 %v607_v56  ;;  %510 = vmatmul.bf16.gmra.mxu3 %v607_v56 }
  0x9b   :  { %v144_v43 = vpop.permute.xlu0 %143 }
  0x9d   :  { %v149_v52 = vpop.permute.xlu1 %148 }
  0xa5   :  { %v248_v58 = vpop.f32.mrf.mxu0 }
  0xa6   :  { %v249_v59 = vadd.f32 %v248_v58, %v114_v57  ;;  %v297_v60 = vpop.f32.mrf.mxu1 }
  0xa7   :  { %v298_v61 = vadd.f32 %v297_v60, %v114_v57 }
  0xa8   :  { %337 = vst [vmem:[#allocation5] sm:$0xff] %v249_v59 }
  0xa9   :  { %338 = vst [vmem:[#allocation5 + $0x8] sm:$0xff] %v298_v61  ;;  %v154_v61 = vpop.permute.xlu2 %153 }
  0xad   :  { %v427_v63 = vpop.f32.mrf.mxu2  ;;  %v476_v1 = vpop.f32.mrf.mxu3 }
  0xae   :  { %v428_v0 = vadd.f32 %v427_v63, %v114_v57  ;;  %v250_v2 = vpop.f32.mrf.mxu0  ;;  %v477_v3 = vadd.f32 %v476_v1, %v114_v57  ;;  %v299_v5 = vpop.f32.mrf.mxu1 }
  0xaf   :  { %v251_v4 = vadd.f32 %v250_v2, %v119_v62  ;;  %v300_v6 = vadd.f32 %v299_v5, %v119_v62 }
  0xb0   :  { %517 = vst [vmem:[#allocation5 + $0x100] sm:$0xff] %v428_v0 }
  0xb1   :  { %518 = vst [vmem:[#allocation5 + $0x108] sm:$0xff] %v477_v3 }
  0xb2   :  { %339 = vst [vmem:[#allocation5 + $0x10] sm:$0xff] %v251_v4 }
  0xb3   :  { %340 = vst [vmem:[#allocation5 + $0x18] sm:$0xff] %v300_v6  ;;  %v159_v6 = vpop.permute.xlu0 %158 }
  0xb5   :  { %v429_v8 = vpop.f32.mrf.mxu2  ;;  %v478_v10 = vpop.f32.mrf.mxu3 }
  0xb6   :  { %v430_v9 = vadd.f32 %v429_v8, %v119_v62  ;;  %v253_v11 = vpop.f32.mrf.mxu0  ;;  %v479_v12 = vadd.f32 %v478_v10, %v119_v62  ;;  %v302_v14 = vpop.f32.mrf.mxu1 }
  0xb7   :  { %v254_v13 = vadd.f32 %v253_v11, %v124_v7  ;;  %v303_v15 = vadd.f32 %v302_v14, %v124_v7 }
  0xb8   :  { %519 = vst [vmem:[#allocation5 + $0x110] sm:$0xff] %v430_v9 }
  0xb9   :  { %520 = vst [vmem:[#allocation5 + $0x118] sm:$0xff] %v479_v12 }
  0xba   :  { %341 = vst [vmem:[#allocation5 + $0x20] sm:$0xff] %v254_v13 }
  0xbb   :  { %342 = vst [vmem:[#allocation5 + $0x28] sm:$0xff] %v303_v15  ;;  %v164_v15 = vpop.permute.xlu1 %163 }
  0xbd   :  { %v432_v17 = vpop.f32.mrf.mxu2  ;;  %v481_v19 = vpop.f32.mrf.mxu3 }
  0xbe   :  { %v433_v18 = vadd.f32 %v432_v17, %v124_v7  ;;  %v255_v20 = vpop.f32.mrf.mxu0  ;;  %v482_v21 = vadd.f32 %v481_v19, %v124_v7  ;;  %v304_v23 = vpop.f32.mrf.mxu1 }
  0xbf   :  { %v256_v22 = vadd.f32 %v255_v20, %v129_v16  ;;  %v305_v24 = vadd.f32 %v304_v23, %v129_v16 }
  0xc0   :  { %521 = vst [vmem:[#allocation5 + $0x120] sm:$0xff] %v433_v18 }
  0xc1   :  { %522 = vst [vmem:[#allocation5 + $0x128] sm:$0xff] %v482_v21 }
  0xc2   :  { %343 = vst [vmem:[#allocation5 + $0x30] sm:$0xff] %v256_v22 }
  0xc3   :  { %344 = vst [vmem:[#allocation5 + $0x38] sm:$0xff] %v305_v24  ;;  %v169_v24 = vpop.permute.xlu2 %168 }
  0xc5   :  { %v434_v26 = vpop.f32.mrf.mxu2  ;;  %v483_v28 = vpop.f32.mrf.mxu3 }
  0xc6   :  { %v435_v27 = vadd.f32 %v434_v26, %v129_v16  ;;  %v258_v29 = vpop.f32.mrf.mxu0  ;;  %v484_v30 = vadd.f32 %v483_v28, %v129_v16  ;;  %v307_v32 = vpop.f32.mrf.mxu1 }
  0xc7   :  { %v259_v31 = vadd.f32 %v258_v29, %v134_v25  ;;  %v308_v33 = vadd.f32 %v307_v32, %v134_v25 }
  0xc8   :  { %523 = vst [vmem:[#allocation5 + $0x130] sm:$0xff] %v435_v27 }
  0xc9   :  { %524 = vst [vmem:[#allocation5 + $0x138] sm:$0xff] %v484_v30 }
  0xca   :  { %345 = vst [vmem:[#allocation5 + $0x40] sm:$0xff] %v259_v31 }
  0xcb   :  { %346 = vst [vmem:[#allocation5 + $0x48] sm:$0xff] %v308_v33  ;;  %v174_v33 = vpop.permute.xlu0 %173 }
  0xcd   :  { %v437_v35 = vpop.f32.mrf.mxu2  ;;  %v486_v37 = vpop.f32.mrf.mxu3 }
  0xce   :  { %v438_v36 = vadd.f32 %v437_v35, %v134_v25  ;;  %v260_v38 = vpop.f32.mrf.mxu0  ;;  %v487_v39 = vadd.f32 %v486_v37, %v134_v25  ;;  %v309_v41 = vpop.f32.mrf.mxu1 }
  0xcf   :  { %v261_v40 = vadd.f32 %v260_v38, %v139_v34  ;;  %v310_v42 = vadd.f32 %v309_v41, %v139_v34 }
  0xd0   :  { %525 = vst [vmem:[#allocation5 + $0x140] sm:$0xff] %v438_v36 }
  0xd1   :  { %526 = vst [vmem:[#allocation5 + $0x148] sm:$0xff] %v487_v39 }
  0xd2   :  { %347 = vst [vmem:[#allocation5 + $0x50] sm:$0xff] %v261_v40 }
  0xd3   :  { %348 = vst [vmem:[#allocation5 + $0x58] sm:$0xff] %v310_v42  ;;  %v179_v42 = vpop.permute.xlu1 %178 }
  0xd5   :  { %v439_v44 = vpop.f32.mrf.mxu2  ;;  %v488_v46 = vpop.f32.mrf.mxu3 }
  0xd6   :  { %v440_v45 = vadd.f32 %v439_v44, %v139_v34  ;;  %v263_v47 = vpop.f32.mrf.mxu0  ;;  %v489_v48 = vadd.f32 %v488_v46, %v139_v34  ;;  %v312_v49 = vpop.f32.mrf.mxu1 }
  0xd7   :  { %v264_v50 = vadd.f32 %v263_v47, %v144_v43  ;;  %v313_v51 = vadd.f32 %v312_v49, %v144_v43 }
  0xd8   :  { %527 = vst [vmem:[#allocation5 + $0x150] sm:$0xff] %v440_v45 }
  0xd9   :  { %528 = vst [vmem:[#allocation5 + $0x158] sm:$0xff] %v489_v48 }
  0xda   :  { %349 = vst [vmem:[#allocation5 + $0x60] sm:$0xff] %v264_v50 }
  0xdb   :  { %350 = vst [vmem:[#allocation5 + $0x68] sm:$0xff] %v313_v51  ;;  %v184_v51 = vpop.permute.xlu2 %183 }
  0xdd   :  { %v442_v53 = vpop.f32.mrf.mxu2  ;;  %v491_v55 = vpop.f32.mrf.mxu3 }
  0xde   :  { %v443_v54 = vadd.f32 %v442_v53, %v144_v43  ;;  %v265_v56 = vpop.f32.mrf.mxu0  ;;  %v492_v57 = vadd.f32 %v491_v55, %v144_v43  ;;  %v314_v59 = vpop.f32.mrf.mxu1 }
  0xdf   :  { %v266_v58 = vadd.f32 %v265_v56, %v149_v52  ;;  %v315_v60 = vadd.f32 %v314_v59, %v149_v52 }
  0xe0   :  { %529 = vst [vmem:[#allocation5 + $0x160] sm:$0xff] %v443_v54 }
  0xe1   :  { %530 = vst [vmem:[#allocation5 + $0x168] sm:$0xff] %v492_v57 }
  0xe2   :  { %351 = vst [vmem:[#allocation5 + $0x70] sm:$0xff] %v266_v58 }
  0xe3   :  { %352 = vst [vmem:[#allocation5 + $0x78] sm:$0xff] %v315_v60  ;;  %v189_v60 = vpop.permute.xlu0 %188 }
  0xe5   :  { %v444_v62 = vpop.f32.mrf.mxu2  ;;  %v493_v0 = vpop.f32.mrf.mxu3 }
  0xe6   :  { %v445_v63 = vadd.f32 %v444_v62, %v149_v52  ;;  %v268_v1 = vpop.f32.mrf.mxu0  ;;  %v494_v2 = vadd.f32 %v493_v0, %v149_v52  ;;  %v317_v3 = vpop.f32.mrf.mxu1 }
  0xe7   :  { %v269_v4 = vadd.f32 %v268_v1, %v154_v61  ;;  %v318_v5 = vadd.f32 %v317_v3, %v154_v61 }
  0xe8   :  { %531 = vst [vmem:[#allocation5 + $0x170] sm:$0xff] %v445_v63 }
  0xe9   :  { %532 = vst [vmem:[#allocation5 + $0x178] sm:$0xff] %v494_v2 }
  0xea   :  { %353 = vst [vmem:[#allocation5 + $0x80] sm:$0xff] %v269_v4 }
  0xeb   :  { %354 = vst [vmem:[#allocation5 + $0x88] sm:$0xff] %v318_v5 }
  0xed   :  { %v447_v7 = vpop.f32.mrf.mxu2  ;;  %v496_v9 = vpop.f32.mrf.mxu3 }
  0xee   :  { %v448_v8 = vadd.f32 %v447_v7, %v154_v61  ;;  %v270_v10 = vpop.f32.mrf.mxu0  ;;  %v497_v11 = vadd.f32 %v496_v9, %v154_v61  ;;  %v319_v13 = vpop.f32.mrf.mxu1 }
  0xef   :  { %v271_v12 = vadd.f32 %v270_v10, %v159_v6  ;;  %v320_v14 = vadd.f32 %v319_v13, %v159_v6 }
  0xf0   :  { %533 = vst [vmem:[#allocation5 + $0x180] sm:$0xff] %v448_v8 }
  0xf1   :  { %534 = vst [vmem:[#allocation5 + $0x188] sm:$0xff] %v497_v11 }
  0xf2   :  { %355 = vst [vmem:[#allocation5 + $0x90] sm:$0xff] %v271_v12 }
  0xf3   :  { %356 = vst [vmem:[#allocation5 + $0x98] sm:$0xff] %v320_v14 }
  0xf5   :  { %v449_v16 = vpop.f32.mrf.mxu2  ;;  %v498_v18 = vpop.f32.mrf.mxu3 }
  0xf6   :  { %v450_v17 = vadd.f32 %v449_v16, %v159_v6  ;;  %v273_v19 = vpop.f32.mrf.mxu0  ;;  %v499_v20 = vadd.f32 %v498_v18, %v159_v6  ;;  %v322_v21 = vpop.f32.mrf.mxu1 }
  0xf7   :  { %v274_v22 = vadd.f32 %v273_v19, %v164_v15  ;;  %v323_v23 = vadd.f32 %v322_v21, %v164_v15 }
  0xf8   :  { %535 = vst [vmem:[#allocation5 + $0x190] sm:$0xff] %v450_v17 }
  0xf9   :  { %536 = vst [vmem:[#allocation5 + $0x198] sm:$0xff] %v499_v20 }
  0xfa   :  { %357 = vst [vmem:[#allocation5 + $0xa0] sm:$0xff] %v274_v22 }
  0xfb   :  { %358 = vst [vmem:[#allocation5 + $0xa8] sm:$0xff] %v323_v23 }
  0xfd   :  { %v452_v25 = vpop.f32.mrf.mxu2  ;;  %v501_v27 = vpop.f32.mrf.mxu3 }
  0xfe   :  { %v453_v26 = vadd.f32 %v452_v25, %v164_v15  ;;  %v275_v28 = vpop.f32.mrf.mxu0  ;;  %v502_v29 = vadd.f32 %v501_v27, %v164_v15  ;;  %v324_v31 = vpop.f32.mrf.mxu1 }
  0xff   :  { %v276_v30 = vadd.f32 %v275_v28, %v169_v24  ;;  %v325_v32 = vadd.f32 %v324_v31, %v169_v24 }
 0x100   :  { %537 = vst [vmem:[#allocation5 + $0x1a0] sm:$0xff] %v453_v26 }
 0x101   :  { %538 = vst [vmem:[#allocation5 + $0x1a8] sm:$0xff] %v502_v29 }
 0x102   :  { %359 = vst [vmem:[#allocation5 + $0xb0] sm:$0xff] %v276_v30 }
 0x103   :  { %360 = vst [vmem:[#allocation5 + $0xb8] sm:$0xff] %v325_v32 }
 0x105   :  { %v454_v34 = vpop.f32.mrf.mxu2  ;;  %v503_v36 = vpop.f32.mrf.mxu3 }
 0x106   :  { %v455_v35 = vadd.f32 %v454_v34, %v169_v24  ;;  %v278_v37 = vpop.f32.mrf.mxu0  ;;  %v504_v38 = vadd.f32 %v503_v36, %v169_v24  ;;  %v327_v40 = vpop.f32.mrf.mxu1 }
 0x107   :  { %v279_v39 = vadd.f32 %v278_v37, %v174_v33  ;;  %v328_v41 = vadd.f32 %v327_v40, %v174_v33 }
 0x108   :  { %539 = vst [vmem:[#allocation5 + $0x1b0] sm:$0xff] %v455_v35 }
 0x109   :  { %540 = vst [vmem:[#allocation5 + $0x1b8] sm:$0xff] %v504_v38 }
 0x10a   :  { %361 = vst [vmem:[#allocation5 + $0xc0] sm:$0xff] %v279_v39 }
 0x10b   :  { %362 = vst [vmem:[#allocation5 + $0xc8] sm:$0xff] %v328_v41 }
 0x10d   :  { %v457_v43 = vpop.f32.mrf.mxu2  ;;  %v506_v45 = vpop.f32.mrf.mxu3 }
 0x10e   :  { %v458_v44 = vadd.f32 %v457_v43, %v174_v33  ;;  %v280_v46 = vpop.f32.mrf.mxu0  ;;  %v507_v47 = vadd.f32 %v506_v45, %v174_v33  ;;  %v329_v49 = vpop.f32.mrf.mxu1 }
 0x10f   :  { %v281_v48 = vadd.f32 %v280_v46, %v179_v42  ;;  %v330_v50 = vadd.f32 %v329_v49, %v179_v42 }
 0x110   :  { %541 = vst [vmem:[#allocation5 + $0x1c0] sm:$0xff] %v458_v44 }
 0x111   :  { %542 = vst [vmem:[#allocation5 + $0x1c8] sm:$0xff] %v507_v47 }
 0x112   :  { %363 = vst [vmem:[#allocation5 + $0xd0] sm:$0xff] %v281_v48 }
 0x113   :  { %364 = vst [vmem:[#allocation5 + $0xd8] sm:$0xff] %v330_v50 }
 0x115   :  { %v459_v52 = vpop.f32.mrf.mxu2  ;;  %v508_v54 = vpop.f32.mrf.mxu3 }
 0x116   :  { %v460_v53 = vadd.f32 %v459_v52, %v179_v42  ;;  %v283_v55 = vpop.f32.mrf.mxu0  ;;  %v509_v56 = vadd.f32 %v508_v54, %v179_v42  ;;  %v332_v58 = vpop.f32.mrf.mxu1 }
 0x117   :  { %v284_v57 = vadd.f32 %v283_v55, %v184_v51  ;;  %v333_v59 = vadd.f32 %v332_v58, %v184_v51 }
 0x118   :  { %543 = vst [vmem:[#allocation5 + $0x1d0] sm:$0xff] %v460_v53 }
 0x119   :  { %544 = vst [vmem:[#allocation5 + $0x1d8] sm:$0xff] %v509_v56 }
 0x11a   :  { %365 = vst [vmem:[#allocation5 + $0xe0] sm:$0xff] %v284_v57 }
 0x11b   :  { %366 = vst [vmem:[#allocation5 + $0xe8] sm:$0xff] %v333_v59 }
 0x11d   :  { %v462_v61 = vpop.f32.mrf.mxu2  ;;  %v511_v63 = vpop.f32.mrf.mxu3 }
 0x11e   :  { %v463_v62 = vadd.f32 %v462_v61, %v184_v51  ;;  %v285_v0 = vpop.f32.mrf.mxu0  ;;  %v512_v1 = vadd.f32 %v511_v63, %v184_v51  ;;  %v334_v3 = vpop.f32.mrf.mxu1 }
 0x11f   :  { %v286_v2 = vadd.f32 %v285_v0, %v189_v60  ;;  %v335_v4 = vadd.f32 %v334_v3, %v189_v60 }
 0x120   :  { %545 = vst [vmem:[#allocation5 + $0x1e0] sm:$0xff] %v463_v62 }
 0x121   :  { %546 = vst [vmem:[#allocation5 + $0x1e8] sm:$0xff] %v512_v1 }
 0x122   :  { %367 = vst [vmem:[#allocation5 + $0xf0] sm:$0xff] %v286_v2 }
 0x123   :  { %368 = vst [vmem:[#allocation5 + $0xf8] sm:$0xff] %v335_v4 }
 0x125   :  { %v464_v5 = vpop.f32.mrf.mxu2  ;;  %v513_v7 = vpop.f32.mrf.mxu3 }
 0x126   :  { %v465_v6 = vadd.f32 %v464_v5, %v189_v60  ;;  %v514_v8 = vadd.f32 %v513_v7, %v189_v60 }
 0x128   :  { %547 = vst [vmem:[#allocation5 + $0x1f0] sm:$0xff] %v465_v6 }
 0x129   :  { %548 = vst [vmem:[#allocation5 + $0x1f8] sm:$0xff] %v514_v8 }
 0x12a   :  { %561 = dma.vmem_to_hbm [thread:$0]  %s554_s2, 8192, %s556_s15, [#allocation4], %s669_s17, %s669_s17, %s670_s18  }
 0x12b   :  { %666 = dma.done.wait [#allocation4], 8192  }
 0x12c   :  { %667 = vsyncadd [#allocation4], 4294959104 }
 0x12d   :  { %566 = vsyncpa [#allocation3], 1 }
 0x12e   :  { %567 = vsyncpa [#allocation4], 1 }

</bundles_post_ra>
